<compile_context>
chip_gen: v5e
topology: v5e:2x2
jax: 0.10.0
libtpu: 0.0.40
codegen_flags: <defaults>
</compile_context>

<pallas_src>
import jax
import jax.numpy as jnp
from jax import lax
from jax.experimental import pallas as pl
from jax.experimental.pallas import tpu as pltpu


def _make_kernel(transposed, batch, tile_b, tiles_per_core):
    """Build the kernel body with layout / tiling baked in as Python constants."""

    def kernel(thr_ref, x_ref, cnt_out, sum_out, loss0_out,
               cnt_sc, sum_sc, loss0_sc):
        c = pl.program_id(0)        # core-split index ("parallel")
        t = pl.program_id(1)        # batch-tile index ("arbitrary" reduce axis)

        @pl.when(t == 0)
        def _init():
            cnt_sc[...] = jnp.zeros_like(cnt_sc)
            sum_sc[...] = jnp.zeros_like(sum_sc)
            loss0_sc[...] = jnp.zeros_like(loss0_sc)

        x = x_ref[...].astype(jnp.float32)
        if transposed:              # x tile: (C, TB)  -- batch on the lane axis
            red_axis, batch_axis = 0, 1
            x0 = x[0:1, :]
        else:                       # x tile: (TB, C)  -- classes on the lane axis
            red_axis, batch_axis = 1, 0
            x0 = x[:, 0:1]

        # Numerically stable CE vs. label 0:  loss_i = LSE(x_i) - x_i[0]
        m = jnp.max(x, axis=red_axis, keepdims=True)
        lse = jnp.log(jnp.sum(jnp.exp(x - m), axis=red_axis, keepdims=True)) + m
        loss = lse - x0             # (1, TB) or (TB, 1)

        # Global batch index of each element of this tile: masks the ragged
        # tail tile and the phantom tiles introduced by the core split.
        tile_start = (c * tiles_per_core + t) * tile_b
        gidx = lax.broadcasted_iota(jnp.int32, loss.shape, batch_axis) + tile_start
        valid = gidx < batch

        thr = thr_ref[0]
        sel = jnp.logical_and(valid, loss > thr)

        cnt_sc[...] += jnp.sum(sel.astype(jnp.float32), keepdims=True)
        sum_sc[...] += jnp.sum(jnp.where(sel, loss, 0.0), keepdims=True)

        # loss[0] (the count==0 fallback value) lives only in the very first tile.
        @pl.when(jnp.logical_and(c == 0, t == 0))
        def _grab_loss0():
            loss0_sc[...] = jnp.sum(jnp.where(gidx == 0, loss, 0.0), keepdims=True)

        # Flush the per-core partials exactly once, on the last reduce step.
        @pl.when(t == tiles_per_core - 1)
        def _finalize():
            cnt_out[...] = jnp.broadcast_to(cnt_sc[...], cnt_out.shape)
            sum_out[...] = jnp.broadcast_to(sum_sc[...], sum_out.shape)
            loss0_out[...] = jnp.broadcast_to(loss0_sc[...], loss0_out.shape)

    return kernel


def nce_softmax_loss_sam_threshold(x, threshold, *, max_batch_tile=None):
    """Forward pass of NCESoftmaxLoss_sam_threshold.

    x: (bsz, num_classes, 1) or (bsz, num_classes) logits.
    threshold: python / numpy / JAX scalar.
    Returns (loss_t / count, count) exactly as the PyTorch module.
    """
    x = jnp.asarray(x)
    if x.ndim == 3 and x.shape[-1] == 1:
        x2d = x.reshape(x.shape[0], x.shape[1])   # explicit: no squeeze footgun
    elif x.ndim == 2:
        x2d = x
    else:
        raise ValueError(f"expected (bsz, num_classes[, 1]) logits, got {x.shape}")
    B, C = x2d.shape

    # Lane-dense layout: put the batch on the 128-lane axis when C is small.
    transposed = C < 128
    x_in = x2d.T if transposed else x2d

    # ---- tiling plan -------------------------------------------------------
    granule = 128 if transposed else 8        # alignment of the batch tile
    itemsize = x_in.dtype.itemsize
    budget = 8 * 1024 * 1024                  # bytes per pipeline buffer (Pallas double-buffers)
    tb = max(granule, (budget // max(1, C * itemsize)) // granule * granule)
    tb = min(tb, 2048 if transposed else 512)
    if max_batch_tile is not None:
        tb = min(tb, max(granule, (max_batch_tile // granule) * granule))
    if B >= granule:
        tb = min(tb, (B // granule) * granule)
    else:
        tb = B                                # whole (small) batch in one tile
    n_tiles = pl.cdiv(B, tb)
    n_cores = 2 if n_tiles >= 2 else 1        # v7x megacore split; plain loop elsewhere
    tiles_per_core = pl.cdiv(n_tiles, n_cores)

    if transposed:
        block = (C, tb)

        def x_index_map(c, t):
            g = jnp.minimum(c * tiles_per_core + t, n_tiles - 1)  # clamp phantom tiles
            return (0, g)
    else:
        block = (tb, C)

        def x_index_map(c, t):
            g = jnp.minimum(c * tiles_per_core + t, n_tiles - 1)
            return (g, 0)

    thr_arr = jnp.asarray(threshold, dtype=jnp.float32).reshape(1)

    # Per-core partials, padded to one lane-dense (8,128) tile each.
    part_shape = jax.ShapeDtypeStruct((n_cores, 8, 128), jnp.float32)
    part_spec = pl.BlockSpec((1, 8, 128), lambda c, t: (c, 0, 0))

    kernel = _make_kernel(transposed, B, tb, tiles_per_core)

    cnt_parts, sum_parts, loss0_parts = pl.pallas_call(
        kernel,
        out_shape=(part_shape, part_shape, part_shape),
        grid=(n_cores, tiles_per_core),
        in_specs=[
            pl.BlockSpec(memory_space=pltpu.MemorySpace.SMEM),   # threshold scalar
            pl.BlockSpec(block, x_index_map),                    # streamed x tile
        ],
        out_specs=(part_spec, part_spec, part_spec),
        scratch_shapes=[
            pltpu.VMEM((1, 1), jnp.float32),   # count accumulator
            pltpu.VMEM((1, 1), jnp.float32),   # selected-loss sum accumulator
            pltpu.VMEM((1, 1), jnp.float32),   # loss[0] (fallback value)
        ],
        compiler_params=pltpu.CompilerParams(
            dimension_semantics=("parallel", "arbitrary"),
            vmem_limit_bytes=32 * 1024 * 1024,
        ),
    )(thr_arr, x_in)

    # Tiny scalar epilogue: combine per-core partials; evaluate the empty-set
    # fallback only after ALL tiles have been reduced.
    cnt = jnp.sum(cnt_parts[:, 0, 0])
    sel_sum = jnp.sum(sum_parts[:, 0, 0])
    loss0 = loss0_parts[0, 0, 0]
    empty = cnt == 0.0
    final_cnt = jnp.where(empty, 1.0, cnt)
    final_sum = jnp.where(empty, loss0, sel_sum)
    return final_sum / final_cnt, final_cnt.astype(jnp.int32)


def _reference(x, threshold):
    # Pure-JAX reference of the PyTorch forward for sanity checking.
    x = jnp.asarray(x)
    x2d = (x.reshape(x.shape[0], x.shape[1]) if x.ndim == 3 else x).astype(jnp.float32)
    loss = jax.nn.logsumexp(x2d, axis=-1) - x2d[:, 0]
    mask = loss > threshold
    cnt = jnp.sum(mask.astype(jnp.int32))
    s = jnp.sum(jnp.where(mask, loss, 0.0))
    final_cnt = jnp.where(cnt == 0, 1, cnt)
    final_sum = jnp.where(cnt == 0, loss[0], s)
    return final_sum / final_cnt.astype(jnp.float32), final_cnt


if __name__ == "__main__":
    key = jax.random.PRNGKey(0)
    k1, k2, k3 = jax.random.split(key, 3)

    cases = [
        # (x, threshold, max_batch_tile)
        # 1) toy NCE shape (1 positive + 16 negatives): lane-dense (C,B) path.
        (jax.random.normal(k1, (8, 17, 1), dtype=jnp.float32), 2.5, None),
        # 2) C >= 128 -> (B,C) layout, two batch tiles + masked ragged tail + core split.
        (jax.random.normal(k2, (520, 256, 1), dtype=jnp.float32), 5.4, None),
        # 3) small-C multi-tile + core split with a phantom tile + count==0 fallback.
        (jax.random.normal(k3, (300, 17, 1), dtype=jnp.float32), 50.0, 128),
    ]

    for x, thr, max_tile in cases:
        loss_val, count_val = nce_softmax_loss_sam_threshold(
            x, thr, max_batch_tile=max_tile)
        jax.block_until_ready((loss_val, count_val))
        ref_loss, ref_count = _reference(x, thr)
        assert int(count_val) == int(ref_count), (count_val, ref_count)
        assert jnp.allclose(loss_val, ref_loss, atol=1e-4, rtol=1e-5), (loss_val, ref_loss)

    print("KERNEL_OK")
</pallas_src>

<mosaic_0001>
module attributes {stable_mosaic.version = 11 : i64} {
  func.func @kernel(%arg0: i32, %arg1: i32, %arg2: memref<1xf32, #tpu.memory_space<smem>>, %arg3: memref<17x8xf32, #tpu.memory_space<vmem>>, %arg4: memref<1x8x128xf32, #tpu.memory_space<vmem>>, %arg5: memref<1x8x128xf32, #tpu.memory_space<vmem>>, %arg6: memref<1x8x128xf32, #tpu.memory_space<vmem>>, %arg7: memref<1x1xf32, #tpu.memory_space<vmem>>, %arg8: memref<1x1xf32, #tpu.memory_space<vmem>>, %arg9: memref<1x1xf32, #tpu.memory_space<vmem>>) attributes {dimension_semantics = [#tpu.dimension_semantics<parallel>, #tpu.dimension_semantics<arbitrary>], iteration_bounds = array<i64: 1, 1>, scalar_prefetch = 0 : i64, scratch_operands = 3 : i64, tpu.core_type = #tpu.core_type<tc>, window_params = [{transform_indices = @transform_0, window_bounds = array<i64: 1>}, {transform_indices = @transform_1, window_bounds = array<i64: 17, 8>}, {transform_indices = @transform_2, window_bounds = array<i64: 1, 8, 128>}, {transform_indices = @transform_3, window_bounds = array<i64: 1, 8, 128>}, {transform_indices = @transform_4, window_bounds = array<i64: 1, 8, 128>}]} {
    %c0_i32 = arith.constant 0 : i32
    %0 = arith.cmpi eq, %arg1, %c0_i32 : i32
    %1 = arith.extui %0 : i1 to i32
    %c0_i32_0 = arith.constant 0 : i32
    %2 = arith.cmpi ne, %1, %c0_i32_0 : i32
    scf.if %2 {
      %cst_21 = arith.constant 0.000000e+00 : f32
      %55 = vector.broadcast %cst_21 : f32 to vector<1x1xf32>
      %c0_22 = arith.constant 0 : index
      %c0_23 = arith.constant 0 : index
      %56 = vector.load %arg7[%c0_22, %c0_23] : memref<1x1xf32, #tpu.memory_space<vmem>>, vector<1x1xf32>
      tpu.vector_store %arg7[%c0_22, %c0_23], %55 {strides = array<i32>} : memref<1x1xf32, #tpu.memory_space<vmem>>, vector<1x1xf32>,
      %cst_24 = arith.constant 0.000000e+00 : f32
      %57 = vector.broadcast %cst_24 : f32 to vector<1x1xf32>
      %c0_25 = arith.constant 0 : index
      %c0_26 = arith.constant 0 : index
      %58 = vector.load %arg8[%c0_25, %c0_26] : memref<1x1xf32, #tpu.memory_space<vmem>>, vector<1x1xf32>
      tpu.vector_store %arg8[%c0_25, %c0_26], %57 {strides = array<i32>} : memref<1x1xf32, #tpu.memory_space<vmem>>, vector<1x1xf32>,
      %cst_27 = arith.constant 0.000000e+00 : f32
      %59 = vector.broadcast %cst_27 : f32 to vector<1x1xf32>
      %c0_28 = arith.constant 0 : index
      %c0_29 = arith.constant 0 : index
      %60 = vector.load %arg9[%c0_28, %c0_29] : memref<1x1xf32, #tpu.memory_space<vmem>>, vector<1x1xf32>
      tpu.vector_store %arg9[%c0_28, %c0_29], %59 {strides = array<i32>} : memref<1x1xf32, #tpu.memory_space<vmem>>, vector<1x1xf32>,
    } else {
    }
    %c0 = arith.constant 0 : index
    %c0_1 = arith.constant 0 : index
    %3 = vector.load %arg3[%c0, %c0_1] : memref<17x8xf32, #tpu.memory_space<vmem>>, vector<17x8xf32>
    %4 = vector.extract_strided_slice %3 {offsets = [0, 0], sizes = [1, 8], strides = [1, 1]} : vector<17x8xf32> to vector<1x8xf32>
    %cst = arith.constant dense<0xFF800000> : vector<8xf32>
    %5 = vector.multi_reduction <maximumf>, %3, %cst [0] : vector<17x8xf32> to vector<8xf32>
    %6 = vector.shape_cast %5 : vector<8xf32> to vector<1x8xf32>
    %7 = vector.broadcast %6 : vector<1x8xf32> to vector<17x8xf32>
    %8 = arith.subf %3, %7 : vector<17x8xf32>
    %9 = math.exp %8 : vector<17x8xf32>
    %cst_2 = arith.constant dense<0.000000e+00> : vector<8xf32>
    %10 = vector.multi_reduction <add>, %9, %cst_2 [0] : vector<17x8xf32> to vector<8xf32>
    %11 = vector.shape_cast %10 : vector<8xf32> to vector<1x8xf32>
    %12 = math.log %11 : vector<1x8xf32>
    %13 = arith.addf %12, %6 : vector<1x8xf32>
    %14 = arith.subf %13, %4 : vector<1x8xf32>
    %c1_i32 = arith.constant 1 : i32
    %15 = arith.muli %arg0, %c1_i32 : i32
    %16 = arith.addi %15, %arg1 : i32
    %c8_i32 = arith.constant 8 : i32
    %17 = arith.muli %16, %c8_i32 : i32
    %18 = tpu.iota {dimensions = array<i32: 1>} : vector<1x8xi32>
    %19 = vector.broadcast %17 : i32 to vector<1x8xi32>
    %20 = arith.addi %18, %19 : vector<1x8xi32>
    %c8_i32_3 = arith.constant 8 : i32
    %21 = vector.broadcast %c8_i32_3 : i32 to vector<1x8xi32>
    %22 = arith.cmpi slt, %20, %21 : vector<1x8xi32>
    %c0_4 = arith.constant 0 : index
    %23 = memref.load %arg2[%c0_4] : memref<1xf32, #tpu.memory_space<smem>>
    %24 = vector.broadcast %23 : f32 to vector<1x8xf32>
    %25 = arith.cmpf ogt, %14, %24 : vector<1x8xf32>
    %26 = arith.andi %22, %25 : vector<1x8xi1>
    %c0_5 = arith.constant 0 : index
    %c0_6 = arith.constant 0 : index
    %27 = vector.load %arg7[%c0_5, %c0_6] : memref<1x1xf32, #tpu.memory_space<vmem>>, vector<1x1xf32>
    %28 = arith.extui %26 : vector<1x8xi1> to vector<1x8xi32>
    %29 = arith.sitofp %28 : vector<1x8xi32> to vector<1x8xf32>
    %30 = vector.shape_cast %29 : vector<1x8xf32> to vector<1x1x8xf32>
    %cst_7 = arith.constant dense<0.000000e+00> : vector<1xf32>
    %31 = vector.multi_reduction <add>, %30, %cst_7 [1, 2] : vector<1x1x8xf32> to vector<1xf32>
    %32 = vector.shape_cast %31 : vector<1xf32> to vector<1x1x1xf32>
    %33 = vector.extract %32[0, 0, 0] : f32 from vector<1x1x1xf32>
    %34 = vector.broadcast %33 : f32 to vector<1x1xf32>
    %35 = arith.addf %27, %34 : vector<1x1xf32>
    %c0_8 = arith.constant 0 : index
    %c0_9 = arith.constant 0 : index
    %36 = vector.load %arg7[%c0_8, %c0_9] : memref<1x1xf32, #tpu.memory_space<vmem>>, vector<1x1xf32>
    tpu.vector_store %arg7[%c0_8, %c0_9], %35 {strides = array<i32>} : memref<1x1xf32, #tpu.memory_space<vmem>>, vector<1x1xf32>,
    %c0_10 = arith.constant 0 : index
    %c0_11 = arith.constant 0 : index
    %37 = vector.load %arg8[%c0_10, %c0_11] : memref<1x1xf32, #tpu.memory_space<vmem>>, vector<1x1xf32>
    %cst_12 = arith.constant 0.000000e+00 : f32
    %38 = vector.broadcast %cst_12 : f32 to vector<1x8xf32>
    %39 = arith.select %26, %14, %38 : vector<1x8xi1>, vector<1x8xf32>
    %40 = vector.shape_cast %39 : vector<1x8xf32> to vector<1x1x8xf32>
    %cst_13 = arith.constant dense<0.000000e+00> : vector<1xf32>
    %41 = vector.multi_reduction <add>, %40, %cst_13 [1, 2] : vector<1x1x8xf32> to vector<1xf32>
    %42 = vector.shape_cast %41 : vector<1xf32> to vector<1x1x1xf32>
    %43 = vector.extract %42[0, 0, 0] : f32 from vector<1x1x1xf32>
    %44 = vector.broadcast %43 : f32 to vector<1x1xf32>
    %45 = arith.addf %37, %44 : vector<1x1xf32>
    %c0_14 = arith.constant 0 : index
    %c0_15 = arith.constant 0 : index
    %46 = vector.load %arg8[%c0_14, %c0_15] : memref<1x1xf32, #tpu.memory_space<vmem>>, vector<1x1xf32>
    tpu.vector_store %arg8[%c0_14, %c0_15], %45 {strides = array<i32>} : memref<1x1xf32, #tpu.memory_space<vmem>>, vector<1x1xf32>,
    %c0_i32_16 = arith.constant 0 : i32
    %47 = arith.cmpi eq, %arg0, %c0_i32_16 : i32
    %c0_i32_17 = arith.constant 0 : i32
    %48 = arith.cmpi eq, %arg1, %c0_i32_17 : i32
    %49 = arith.andi %47, %48 : i1
    %50 = arith.extui %49 : i1 to i32
    %c0_i32_18 = arith.constant 0 : i32
    %51 = arith.cmpi ne, %50, %c0_i32_18 : i32
    scf.if %51 {
      %c0_i32_21 = arith.constant 0 : i32
      %55 = vector.broadcast %c0_i32_21 : i32 to vector<1x8xi32>
      %56 = arith.cmpi eq, %20, %55 : vector<1x8xi32>
      %cst_22 = arith.constant 0.000000e+00 : f32
      %57 = vector.broadcast %cst_22 : f32 to vector<1x8xf32>
      %58 = arith.select %56, %14, %57 : vector<1x8xi1>, vector<1x8xf32>
      %59 = vector.shape_cast %58 : vector<1x8xf32> to vector<1x1x8xf32>
      %cst_23 = arith.constant dense<0.000000e+00> : vector<1xf32>
      %60 = vector.multi_reduction <add>, %59, %cst_23 [1, 2] : vector<1x1x8xf32> to vector<1xf32>
      %61 = vector.shape_cast %60 : vector<1xf32> to vector<1x1x1xf32>
      %62 = vector.extract %61[0, 0, 0] : f32 from vector<1x1x1xf32>
      %63 = vector.broadcast %62 : f32 to vector<1x1xf32>
      %c0_24 = arith.constant 0 : index
      %c0_25 = arith.constant 0 : index
      %64 = vector.load %arg9[%c0_24, %c0_25] : memref<1x1xf32, #tpu.memory_space<vmem>>, vector<1x1xf32>
      tpu.vector_store %arg9[%c0_24, %c0_25], %63 {strides = array<i32>} : memref<1x1xf32, #tpu.memory_space<vmem>>, vector<1x1xf32>,
    } else {
    }
    %c0_i32_19 = arith.constant 0 : i32
    %52 = arith.cmpi eq, %arg1, %c0_i32_19 : i32
    %53 = arith.extui %52 : i1 to i32
    %c0_i32_20 = arith.constant 0 : i32
    %54 = arith.cmpi ne, %53, %c0_i32_20 : i32
    scf.if %54 {
      %c0_21 = arith.constant 0 : index
      %c0_22 = arith.constant 0 : index
      %55 = vector.load %arg7[%c0_21, %c0_22] : memref<1x1xf32, #tpu.memory_space<vmem>>, vector<1x1xf32>
      %56 = vector.shape_cast %55 : vector<1x1xf32> to vector<1x1x1xf32>
      %57 = vector.broadcast %56 : vector<1x1x1xf32> to vector<1x8x128xf32>
      %c0_23 = arith.constant 0 : index
      %c0_24 = arith.constant 0 : index
      %c0_25 = arith.constant 0 : index
      %58 = vector.load %arg4[%c0_23, %c0_24, %c0_25] : memref<1x8x128xf32, #tpu.memory_space<vmem>>, vector<1x8x128xf32>
      tpu.vector_store %arg4[%c0_23, %c0_24, %c0_25], %57 {strides = array<i32>} : memref<1x8x128xf32, #tpu.memory_space<vmem>>, vector<1x8x128xf32>,
      %c0_26 = arith.constant 0 : index
      %c0_27 = arith.constant 0 : index
      %59 = vector.load %arg8[%c0_26, %c0_27] : memref<1x1xf32, #tpu.memory_space<vmem>>, vector<1x1xf32>
      %60 = vector.shape_cast %59 : vector<1x1xf32> to vector<1x1x1xf32>
      %61 = vector.broadcast %60 : vector<1x1x1xf32> to vector<1x8x128xf32>
      %c0_28 = arith.constant 0 : index
      %c0_29 = arith.constant 0 : index
      %c0_30 = arith.constant 0 : index
      %62 = vector.load %arg5[%c0_28, %c0_29, %c0_30] : memref<1x8x128xf32, #tpu.memory_space<vmem>>, vector<1x8x128xf32>
      tpu.vector_store %arg5[%c0_28, %c0_29, %c0_30], %61 {strides = array<i32>} : memref<1x8x128xf32, #tpu.memory_space<vmem>>, vector<1x8x128xf32>,
      %c0_31 = arith.constant 0 : index
      %c0_32 = arith.constant 0 : index
      %63 = vector.load %arg9[%c0_31, %c0_32] : memref<1x1xf32, #tpu.memory_space<vmem>>, vector<1x1xf32>
      %64 = vector.shape_cast %63 : vector<1x1xf32> to vector<1x1x1xf32>
      %65 = vector.broadcast %64 : vector<1x1x1xf32> to vector<1x8x128xf32>
      %c0_33 = arith.constant 0 : index
      %c0_34 = arith.constant 0 : index
      %c0_35 = arith.constant 0 : index
      %66 = vector.load %arg6[%c0_33, %c0_34, %c0_35] : memref<1x8x128xf32, #tpu.memory_space<vmem>>, vector<1x8x128xf32>
      tpu.vector_store %arg6[%c0_33, %c0_34, %c0_35], %65 {strides = array<i32>} : memref<1x8x128xf32, #tpu.memory_space<vmem>>, vector<1x8x128xf32>,
    } else {
    }
    return
  }
  func.func @transform_0(%arg0: i32, %arg1: i32) -> i32 {
    %c0_i32 = arith.constant 0 : i32
    %c0_i32_0 = arith.constant 0 : i32
    return %c0_i32 : i32
  }
  func.func @transform_1(%arg0: i32, %arg1: i32) -> (i32, i32) {
    %c1_i32 = arith.constant 1 : i32
    %0 = arith.muli %arg0, %c1_i32 : i32
    %1 = arith.addi %0, %arg1 : i32
    %c0_i32 = arith.constant 0 : i32
    %2 = arith.minsi %1, %c0_i32 : i32
    %c0_i32_0 = arith.constant 0 : i32
    %c0_i32_1 = arith.constant 0 : i32
    return %c0_i32_0, %2 : i32, i32
  }
  func.func @transform_2(%arg0: i32, %arg1: i32) -> (i32, i32, i32) {
    %c0_i32 = arith.constant 0 : i32
    %c0_i32_0 = arith.constant 0 : i32
    %c0_i32_1 = arith.constant 0 : i32
    return %arg0, %c0_i32, %c0_i32_0 : i32, i32, i32
  }
  func.func @transform_3(%arg0: i32, %arg1: i32) -> (i32, i32, i32) {
    %c0_i32 = arith.constant 0 : i32
    %c0_i32_0 = arith.constant 0 : i32
    %c0_i32_1 = arith.constant 0 : i32
    return %arg0, %c0_i32, %c0_i32_0 : i32, i32, i32
  }
  func.func @transform_4(%arg0: i32, %arg1: i32) -> (i32, i32, i32) {
    %c0_i32 = arith.constant 0 : i32
    %c0_i32_0 = arith.constant 0 : i32
    %c0_i32_1 = arith.constant 0 : i32
    return %arg0, %c0_i32, %c0_i32_0 : i32, i32, i32
  }
}

</mosaic_0001>

<bundles_post_ra>
// kernel: tpu_custom_call.1
= control target key start
LH: loop header
LB: loop body
LE: loop exit
PB: predicated region body
PF: predicated region fallthrough
CT: control target
= control target key end

     0   :  { %11 = vsyncpa [#allocation7], 0  ;;  %vm55_vm0 = vcmask 64512   ;;  %vm58_vm1 = vcmask 57344   ;;  %s402_s0 = inlined_call_operand.<no memory space> [shape: f32[1], index: 0, kind: input, shape index: {}]   ;;  %s403_s1 = inlined_call_operand.vmem [shape: f32[17,8], index: 1, kind: input, shape index: {}]   ;;  %s404_s2 = inlined_call_operand.hbm [shape: f32[1,8,128], index: 2, kind: output, shape index: {0}]   ;;  %s405_s3 = inlined_call_operand.hbm [shape: f32[1,8,128], index: 3, kind: output, shape index: {1}]   ;;  %s406_s4 = inlined_call_operand.hbm [shape: f32[1,8,128], index: 4, kind: output, shape index: {2}]  }
   0x1   :  { %v52_v0 = vld [vmem:[%s403_s1] sm:$0xff]  ;;  %v53_v1 = vld [vmem:[%s403_s1 + $0x8] sm:$0xff]  ;;  %v54_v2 = vld [vmem:[%s403_s1 + $0x10] sm:$0x1] }
   0x2   :  { %v56_v3 = vsel %vm55_vm0, %v52_v0, -inf  ;;  %v57_v4 = vsel %vm55_vm0, %v53_v1, -inf }
   0x3   :  { %12 = vsyncpa [#allocation9], 0  ;;  %v59_v5 = vsel %vm58_vm1, %v54_v2, -inf  ;;  %v60_v6 = vmax.f32 %v56_v3, %v57_v4  ;;  %vm48_vm2 = vcmask 0   ;;  %v336_v28 = vmov 0.0   ;;  %s338_s24 = smov [#allocation6]  }
   0x4   :  { %49 = vst.msk [vmem:[#allocation2] sm:$0x1] %vm48_vm2, %v336_v28  ;;  %v94_v35 = vlaneseq  ;;  %v100_v40 = vstv %s402_s0  ;;  %s186_s25 = sshll.u32 %s338_s24, 4  ;;  %s188_s28 = sshll.u32 %s404_s2, 4  ;;  %s187_s25 = int_to_ptr.vmem [resolvable:$true] %s186_s25  ;;  %s189_s28 = int_to_ptr.hbm [resolvable:$true] %s188_s28 }
   0x5   :  { %v61_v7 = vmax.f32 %v60_v6, %v59_v5  ;;  %50 = vst.msk [vmem:[#allocation3] sm:$0x1] %vm48_vm2, %v336_v28  ;;  %v337_v5 = vmov 0   ;;  %s339_s29 = smov [#allocation8]   ;;  %s199_s7 = sshll.u32 %s405_s3, 4  ;;  %s200_s7 = int_to_ptr.hbm [resolvable:$true] %s199_s7 }
   0x6   :  { %51 = vst.msk [vmem:[#allocation4] sm:$0x1] %vm48_vm2, %v336_v28  ;;  %v95_v38 = vand.u32 127, %v94_v35  ;;  %247 = vset.pattern.permute.xlu2 %v337_v5  ;;  %246 = vset.pattern.permute.xlu1 %v337_v5  ;;  %s197_s30 = sshll.u32 %s339_s29, 4  ;;  %s340_s8 = smov [#allocation10]   ;;  %s198_s30 = int_to_ptr.vmem [resolvable:$true] %s197_s30 }
   0x7   :  { %v62_v8 = vrot.slane %v61_v7, 4  ;;  %248 = vset.pattern.permute.xlu0 %v337_v5  ;;  %s208_s9 = sshll.u32 %s340_s8, 4  ;;  %s210_s12 = sshll.u32 %s406_s4, 4  ;;  %s209_s9 = int_to_ptr.vmem [resolvable:$true] %s208_s9  ;;  %s211_s12 = int_to_ptr.hbm [resolvable:$true] %s210_s12 }
   0x8   :  { %vm140_vm3 = vcmp.eq.s32.totalorder %v95_v38, 0  ;;  %vm98_vm4 = vcmp.lt.s32.totalorder %v95_v38, 8 }
   0x9   :  { %v63_v9 = vmax.f32 %v61_v7, %v62_v8 }
   0xb   :  { %v64_v10 = vrot.slane %v63_v9, 2  ;;  %v103_v6 = vld [vmem:[#allocation2] sm:$0x1] }
   0xd   :  { %v65_v11 = vmax.f32 %v63_v9, %v64_v10  ;;  %v120_v9 = vld [vmem:[#allocation3] sm:$0x1] }
   0xf   :  { %v66_v12 = vrot.slane %v65_v11, 1 }
  0x11   :  { %v67_v13 = vmax.f32 %v65_v11, %v66_v12 }
  0x13   :  { %v68_v14 = vsub.f32 %v52_v0, %v67_v13  ;;  %v69_v15 = vsub.f32 %v53_v1, %v67_v13  ;;  %v70_v16 = vsub.f32 %v54_v2, %v67_v13 }
  0x15   :  { %v71_v17 = vmul.f32 1.442695, %v68_v14  ;;  %v73_v18 = vmul.f32 1.442695, %v69_v15  ;;  %v75_v19 = vmul.f32 1.442695, %v70_v16 }
  0x17   :  { %252 = vpow2.f32 %v71_v17 }
  0x18   :  { %254 = vpow2.f32 %v73_v18 }
  0x19   :  { %256 = vpow2.f32 %v75_v19 }
  0x1d   :  { %v253_v20 = vpop.eup %252 }
  0x1e   :  { %v255_v21 = vpop.eup %254  ;;  %v77_v22 = vsel %vm55_vm0, %v253_v20, 0.0 }
  0x1f   :  { %v257_v23 = vpop.eup %256  ;;  %v78_v24 = vsel %vm55_vm0, %v255_v21, 0.0 }
  0x20   :  { %v79_v25 = vadd.f32 %v78_v24, %v77_v22  ;;  %v80_v26 = vsel %vm58_vm1, %v257_v23, 0.0 }
  0x22   :  { %v81_v27 = vadd.f32 %v80_v26, %v79_v25 }
  0x24   :  { %v82_v29 = vrot.slane %v81_v27, 4 }
  0x26   :  { %v83_v30 = vadd.f32 %v82_v29, %v81_v27 }
  0x28   :  { %v84_v31 = vrot.slane %v83_v30, 2 }
  0x2a   :  { %v85_v32 = vadd.f32 %v84_v31, %v83_v30 }
  0x2c   :  { %v86_v33 = vrot.slane %v85_v32, 1 }
  0x2e   :  { %v87_v34 = vadd.f32 %v86_v33, %v85_v32 }
  0x30   :  { %258 = vlog2.f32 %v87_v34 }
  0x36   :  { %v259_v36 = vpop.eup %258 }
  0x37   :  { %v89_v37 = vmul.f32 0.6931472, %v259_v36 }
  0x39   :  { %v90_v39 = vadd.f32 %v89_v37, %v67_v13 }
  0x3b   :  { %v91_v41 = vsub.f32 %v90_v39, %v52_v0 }
  0x3d   :  { %vm101_vm5 = vcmp.gt.f32.partialorder %v91_v41, %v100_v40  ;;  %v141_v42 = vsel %vm140_vm3, %v91_v41, 0.0 }
  0x3e   :  { %vm102_vm6 = vmand %vm98_vm4, %vm101_vm5  ;;  %v142_v43 = vsel %vm58_vm1, %v141_v42, 0.0 }
  0x3f   :  { %v234_v44 = vsel %vm102_vm6, 1.0, %v336_v28  ;;  %143 = vadd.xlane.f32.xlu1 %v142_v43  ;;  %v121_v46 = vsel %vm102_vm6, %v91_v41, 0.0 }
  0x40   :  { %v106_v45 = vsel %vm58_vm1, %v234_v44, 0.0  ;;  %v122_v47 = vsel %vm58_vm1, %v121_v46, 0.0 }
  0x41   :  { %107 = vadd.xlane.f32.xlu0 %v106_v45 }
  0x49   :  { %123 = vadd.xlane.f32.xlu0 %v122_v47 }
  0xb2   :  { %v144_v48 = vpop.xlane.xlu1 %143 }
  0xb3   :  { %v145_v49 = vrot.slane %v144_v48, 4 }
  0xb4   :  { %v108_v50 = vpop.xlane.xlu0 %107 }
  0xb5   :  { %v109_v51 = vrot.slane %v108_v50, 4  ;;  %v146_v52 = vadd.f32 %v145_v49, %v144_v48 }
  0xb7   :  { %v110_v53 = vadd.f32 %v109_v51, %v108_v50  ;;  %v147_v55 = vrot.slane %v146_v52, 2 }
  0xb9   :  { %v111_v54 = vrot.slane %v110_v53, 2  ;;  %v148_v60 = vadd.f32 %v147_v55, %v146_v52 }
  0xbb   :  { %v112_v56 = vadd.f32 %v111_v54, %v110_v53  ;;  %v149_v0 = vrot.slane %v148_v60, 1 }
  0xbc   :  { %v124_v57 = vpop.xlane.xlu0 %123 }
  0xbd   :  { %v125_v58 = vrot.slane %v124_v57, 4  ;;  %v113_v59 = vrot.slane %v112_v56, 1  ;;  %v150_v3 = vadd.f32 %v149_v0, %v148_v60 }
  0xbf   :  { %v126_v61 = vadd.f32 %v125_v58, %v124_v57  ;;  %v114_v62 = vadd.f32 %v113_v59, %v112_v56 }
  0xc1   :  { %v127_v63 = vrot.slane %v126_v61, 2  ;;  %235 = vpush %v114_v62 }
  0xc3   :  { %v128_v1 = vadd.f32 %v127_v63, %v126_v61 }
  0xc5   :  { %v129_v2 = vrot.slane %v128_v1, 1 }
  0xc7   :  { %v130_v4 = vadd.f32 %v129_v2, %v128_v1 }
  0xc9   :  { %237 = vpush %v130_v4 }
  0xca   :  { %239 = vpush %v150_v3 }
  0xf2   :  { %s236_s0 = spop %235 }
  0xf3   :  { %v116_v7 = vstv %s236_s0 }
  0xf4   :  { %v117_v8 = vadd.f32 %v116_v7, %v103_v6 }
  0xf6   :  { %119 = vst.msk [vmem:[#allocation2] sm:$0x1] %vm48_vm2, %v117_v8 }
  0xfa   :  { %s238_s22 = spop %237 }
  0xfb   :  { %v132_v10 = vstv %s238_s22  ;;  %s240_s23 = spop %239 }
  0xfc   :  { %v133_v11 = vadd.f32 %v132_v10, %v120_v9  ;;  %v152_v12 = vstv %s240_s23 }
  0xfd   :  { %v249_v13 = vld [vmem:[#allocation2] ss:$0 sm:$0xff]  ;;  %153 = vst.msk [vmem:[#allocation4] sm:$0x1] %vm48_vm2, %v152_v12 }
  0xfe   :  { %134 = vst.msk [vmem:[#allocation3] sm:$0x1] %vm48_vm2, %v133_v11  ;;  %161 = vperm.xlu2 %247, %v249_v13  }
 0x104   :  { %v251_v14 = vld [vmem:[#allocation4] ss:$0 sm:$0xff] }
 0x105   :  { %v250_v15 = vld [vmem:[#allocation3] ss:$0 sm:$0xff] }
 0x106   :  { %169 = vperm.xlu1 %246, %v250_v15   ;;  %177 = vperm.xlu2 %247, %v251_v14  }
 0x158   :  { %v162_v16 = vpop.permute.xlu2 %161 }
 0x159   :  { %164 = vst [vmem:[#allocation6] sm:$0xff] %v162_v16 }
 0x15a   :  { %191 = dma.vmem_to_hbm [thread:$0]  %s187_s25, 128, %s189_s28, [#allocation7]  }
 0x160   :  { %v178_v17 = vpop.permute.xlu2 %177 }
 0x161   :  { %180 = vst [vmem:[#allocation10] sm:$0xff] %v178_v17 }
 0x178   :  { %v170_v18 = vpop.permute.xlu1 %169 }
 0x179   :  { %172 = vst [vmem:[#allocation8] sm:$0xff] %v170_v18 }
 0x17a   :  { %202 = dma.vmem_to_hbm [thread:$0]  %s198_s30, 128, %s200_s7, [#allocation9]  }
 0x17b   :  { %213 = dma.vmem_to_hbm [thread:$0]  %s209_s9, 128, %s211_s12, [#allocation9]  }
 0x17c   :  { %332 = dma.done.wait [#allocation7], 128  }
 0x17d   :  { %333 = vsyncadd [#allocation7], 4294967168 }
 0x17e   :  { %334 = dma.done.wait [#allocation9], 256  }
 0x17f   :  { %335 = vsyncadd [#allocation9], 4294967040 }
 0x180   :  { %226 = vsyncpa [#allocation7], 1 }
 0x181   :  { %227 = vsyncpa [#allocation9], 1 }

</bundles_post_ra>
